<compile_context>
chip_gen: v7x
topology: tpu7x:2x2x1
jax: 0.10.0
libtpu: 0.0.40
codegen_flags: <defaults>
</compile_context>

<pallas_src>
import jax
import jax.numpy as jnp
from jax import lax
from jax.experimental import pallas as pl
from jax.experimental.pallas import tpu as pltpu


def _conv2d_kernel(p_ref, w_ref, o_ref):
    # p_ref: (Cin*K*K + 1, TM)  im2col patch columns (last row is all-ones)
    # w_ref: (Cout, Cin*K*K + 1) weight slab (last column is the bias)
    # o_ref: (Cout, TM)          lane-dense output band
    o_ref[...] = jnp.dot(
        w_ref[...], p_ref[...], preferred_element_type=jnp.float32
    ).astype(o_ref.dtype)


def _pick_lane_band(M):
    """Largest 128-multiple band (<= 2048) that divides M, else the full axis."""
    for cand in (2048, 1024, 512, 256, 128):
        if cand <= M and M % cand == 0:
            return cand
    return M


def bev_plane_conv(x_nchw, weight_oihw, bias, *, padding):
    """Forward pass of BeVplaneConv (Conv2d branch), stride 1.

    x_nchw:      (N, Cin, H, W)   -- PyTorch NCHW convention
    weight_oihw: (Cout, Cin, K, K)
    bias:        (Cout,)
    returns:     (N, Cout, H_out, W_out) with H_out = H + 2*padding - K + 1
    """
    N, Cin, H, W = x_nchw.shape
    Cout, _, K, _ = weight_oihw.shape
    p = padding
    Ho = H + 2 * p - K + 1
    Wo = W + 2 * p - K + 1
    KKC = Cin * K * K
    KKC1 = KKC + 1              # +1 row/column for the folded bias
    M = N * Ho * Wo             # lane axis: (n, ho, wo) flattened

    # ---- wrapper-side im2col (contraction rows ordered (cin, kh, kw)) ----
    x_pad = jnp.pad(x_nchw, ((0, 0), (0, 0), (p, p), (p, p)))
    taps = [x_pad[:, :, kh:kh + Ho, kw:kw + Wo]       # each (N, Cin, Ho, Wo)
            for kh in range(K) for kw in range(K)]
    # (K*K, N, Cin, Ho, Wo) -> (Cin, K*K, N, Ho, Wo) -> (Cin*K*K, N*Ho*Wo)
    patches = jnp.transpose(jnp.stack(taps, axis=0), (2, 0, 1, 3, 4))
    patches = patches.reshape(KKC, M)
    # Bias folding: constant ones row on the patches, bias column on weights.
    patches = jnp.concatenate(
        [patches, jnp.ones((1, M), patches.dtype)], axis=0)          # (KKC1, M)
    w_slab = weight_oihw.reshape(Cout, KKC)                           # (cin,kh,kw)
    w_slab = jnp.concatenate(
        [w_slab, bias.reshape(Cout, 1).astype(w_slab.dtype)], axis=1)  # (Cout, KKC1)

    tm = _pick_lane_band(M)
    grid = (M // tm,) if M % tm == 0 else (pl.cdiv(M, tm),)

    itemsize = jnp.dtype(x_nchw.dtype).itemsize
    flops = 2 * M * KKC1 * Cout
    bytes_accessed = (patches.size + w_slab.size + Cout * M) * itemsize

    out_flat = pl.pallas_call(
        _conv2d_kernel,
        out_shape=jax.ShapeDtypeStruct((Cout, M), x_nchw.dtype),
        grid_spec=pltpu.PrefetchScalarGridSpec(
            num_scalar_prefetch=0,
            grid=grid,
            in_specs=[
                pl.BlockSpec((KKC1, tm), lambda i: (0, i)),
                # Constant weight slab (resident across the whole grid).
                # TODO(synk): at production weight sizes use
                # pipeline_mode=pl.Buffered(1) to drop its redundant double buffer.
                pl.BlockSpec((Cout, KKC1), lambda i: (0, 0)),
            ],
            out_specs=pl.BlockSpec((Cout, tm), lambda i: (0, i)),
        ),
        compiler_params=pltpu.CompilerParams(
            # Bands are independent; lets v7x shard >=2 bands across its 2 TCs.
            dimension_semantics=("parallel",),
        ),
        cost_estimate=pl.CostEstimate(
            flops=flops, transcendentals=0, bytes_accessed=bytes_accessed),
    )(patches, w_slab)

    # (Cout, N*Ho*Wo) -> (Cout, N, Ho, Wo) -> (N, Cout, Ho, Wo)
    return jnp.transpose(out_flat.reshape(Cout, N, Ho, Wo), (1, 0, 2, 3))


if __name__ == "__main__":
    # Module config: BeVplaneConv(channels=4, out_channels=8, kernel_size=3, padding=1)
    N, Cin, H, W = 2, 4, 16, 16
    Cout, K, PAD = 8, 3, 1

    key = jax.random.PRNGKey(0)
    kx, kw, kb = jax.random.split(key, 3)
    x = jax.random.normal(kx, (N, Cin, H, W), dtype=jnp.float32)
    # Deterministic synthetic parameters (Conv2d shapes: (Cout, Cin, K, K), (Cout,))
    weight = jax.random.normal(kw, (Cout, Cin, K, K), dtype=jnp.float32) * 0.1
    bias = jax.random.normal(kb, (Cout,), dtype=jnp.float32) * 0.1

    out = bev_plane_conv(x, weight, bias, padding=PAD)
    out = jax.block_until_ready(out)

    # Reference check against XLA's convolution (same semantics as nn.Conv2d).
    ref = lax.conv_general_dilated(
        x, weight,
        window_strides=(1, 1),
        padding=((PAD, PAD), (PAD, PAD)),
        dimension_numbers=("NCHW", "OIHW", "NCHW"),
    ) + bias[None, :, None, None]

    assert out.shape == (N, Cout, H, W), out.shape
    assert jnp.allclose(out, ref, atol=1e-4, rtol=1e-4), float(
        jnp.max(jnp.abs(out - ref))
    )

    print("KERNEL_OK")
</pallas_src>

<mosaic_0001>
module attributes {stable_mosaic.version = 11 : i64} {
  func.func @_conv2d_kernel(%arg0: i32, %arg1: memref<37x512xf32, #tpu.memory_space<vmem>>, %arg2: memref<8x37xf32, #tpu.memory_space<vmem>>, %arg3: memref<8x512xf32, #tpu.memory_space<vmem>>) attributes {dimension_semantics = [#tpu.dimension_semantics<parallel>], iteration_bounds = array<i64: 1>, scalar_prefetch = 0 : i64, scratch_operands = 0 : i64, tpu.core_type = #tpu.core_type<tc>, window_params = [{transform_indices = @transform_0, window_bounds = array<i64: 37, 512>}, {pipeline_mode = #tpu.pipeline_mode<synchronous>, transform_indices = @transform_1, window_bounds = array<i64: 8, 37>}, {transform_indices = @transform_2, window_bounds = array<i64: 8, 512>}]} {
    %c0 = arith.constant 0 : index
    %c0_0 = arith.constant 0 : index
    %0 = vector.load %arg2[%c0, %c0_0] : memref<8x37xf32, #tpu.memory_space<vmem>>, vector<8x37xf32>
    %c0_1 = arith.constant 0 : index
    %c0_2 = arith.constant 0 : index
    %1 = vector.load %arg1[%c0_1, %c0_2] : memref<37x512xf32, #tpu.memory_space<vmem>>, vector<37x512xf32>
    %cst = arith.constant dense<0.000000e+00> : vector<8x512xf32>
    %2 = tpu.matmul %0, %1, %cst {dimension_numbers = #tpu.dot_dimension_numbers<[1], [0], [0], [1], [0, 0, 1, 1], [], []>} : vector<8x37xf32>, vector<37x512xf32>, vector<8x512xf32> -> vector<8x512xf32>
    %c0_3 = arith.constant 0 : index
    %c0_4 = arith.constant 0 : index
    %3 = vector.load %arg3[%c0_3, %c0_4] : memref<8x512xf32, #tpu.memory_space<vmem>>, vector<8x512xf32>
    tpu.vector_store %arg3[%c0_3, %c0_4], %2 {strides = array<i32>} : memref<8x512xf32, #tpu.memory_space<vmem>>, vector<8x512xf32>,
    return
  }
  func.func @transform_0(%arg0: i32) -> (i32, i32) {
    %c0_i32 = arith.constant 0 : i32
    %c0_i32_0 = arith.constant 0 : i32
    return %c0_i32, %arg0 : i32, i32
  }
  func.func @transform_1(%arg0: i32) -> (i32, i32) {
    %c0_i32 = arith.constant 0 : i32
    %c0_i32_0 = arith.constant 0 : i32
    %c0_i32_1 = arith.constant 0 : i32
    return %c0_i32, %c0_i32_0 : i32, i32
  }
  func.func @transform_2(%arg0: i32) -> (i32, i32) {
    %c0_i32 = arith.constant 0 : i32
    %c0_i32_0 = arith.constant 0 : i32
    return %c0_i32, %arg0 : i32, i32
  }
}

</mosaic_0001>

<bundles_post_ra>
// kernel: tpu_custom_call.1
= control target key start
LH: loop header
LB: loop body
LE: loop exit
PB: predicated region body
PF: predicated region fallthrough
CT: control target
= control target key end

     0   :  { %7 = vsyncpa [#allocation3], 0  ;;  %s395_s0 = inlined_call_operand.hbm [shape: f32[37,512], index: 0, kind: input, shape index: {}]   ;;  %s396_s1 = inlined_call_operand.hbm [shape: f32[8,37], index: 1, kind: input, shape index: {}]   ;;  %s397_s2 = inlined_call_operand.hbm [shape: f32[8,512], index: 2, kind: output, shape index: {}]  }
   0x1   :  { %8 = vsyncpa [#allocation6], 0 }
   0x2   :  { %9 = vsyncpa [#allocation4], 0  ;;  %s338_s9 = smov [#allocation2]   ;;  %s266_s13 = scalar_lea.hbm %s395_s0, 2560 }
   0x3   :  { %s15_s10 = sshll.u32 %s338_s9, 4  ;;  %p267_p0 = scmp.ne.s32.totalorder %s395_s0, %s266_s13  ;;  %s16_s10 = int_to_ptr.vmem [resolvable:$true] %s15_s10 }
   0x4   :  { %p270_p1 = scmp.lt.u32.totalorder %s266_s13, %s395_s0 }
   0x6   :  { %p272_p2 = pnand %p270_p1, %p267_p0 }
   0x8   :  { %275 = shalt.err (!%p272_p2)
}
   0x9   :  { %s276_s18 = scalar_lea.vmem %s16_s10, 2560  ;;  %p281_p4 = scmp.lt.s32.totalorder %s16_s10, %s16_s10 }
   0xa   :  { %p277_p3 = scmp.ne.s32.totalorder %s16_s10, %s276_s18  ;;  %p282_p5 = scmp.lt.s32.totalorder %s276_s18, %s276_s18 }
   0xc   :  { %p283_p6 = por %p282_p5, %p281_p4 }
   0xe   :  { %p284_p7 = pnand %p283_p6, %p277_p3 }
  0x10   :  { %287 = shalt.err (!%p284_p7)
}
  0x11   :  { %s339_s19 = smov 512   ;;  %s340_s20 = smov 32  }
  0x12   :  { %21 = dma.hbm_to_vmem [thread:$0]  %s395_s0, 2560, %s16_s10, [#allocation3], %s339_s19, %s339_s19, %s340_s20  }
  0x13   :  { %s341_s23 = smov [#allocation5]   ;;  %s288_s27 = scalar_lea.hbm %s396_s1, 128 }
  0x14   :  { %s28_s24 = sshll.u32 %s341_s23, 4  ;;  %p289_p8 = scmp.ne.s32.totalorder %s396_s1, %s288_s27  ;;  %s29_s24 = int_to_ptr.vmem [resolvable:$true] %s28_s24 }
  0x15   :  { %p292_p9 = scmp.lt.u32.totalorder %s288_s27, %s396_s1 }
  0x17   :  { %p294_p10 = pnand %p292_p9, %p289_p8 }
  0x19   :  { %297 = shalt.err (!%p294_p10)
}
  0x1a   :  { %s298_s4 = scalar_lea.vmem %s29_s24, 128  ;;  %p303_p12 = scmp.lt.s32.totalorder %s29_s24, %s29_s24 }
  0x1b   :  { %p299_p11 = scmp.ne.s32.totalorder %s29_s24, %s298_s4  ;;  %p304_p13 = scmp.lt.s32.totalorder %s298_s4, %s298_s4 }
  0x1d   :  { %p305_p0 = por %p304_p13, %p303_p12 }
  0x1f   :  { %p306_p1 = pnand %p305_p0, %p299_p11 }
  0x21   :  { %309 = shalt.err (!%p306_p1)
}
  0x22   :  { %31 = dma.hbm_to_vmem [thread:$0]  %s396_s1, 128, %s29_s24, [#allocation6]  }
  0x23   :  { %332 = dma.done.wait [#allocation3], 2560  }
  0x24   :  { %333 = vsyncadd [#allocation3], 4294964736 }
  0x25   :  { %334 = dma.done.wait [#allocation6], 128  }
  0x26   :  { %335 = vsyncadd [#allocation6], 4294967168  ;;  %v342_v0 = vmov 0.0   ;;  %v40_v1 = vld [vmem:[#allocation2 + $0x8] sm:$0xff]  ;;  %v42_v3 = vld [vmem:[#allocation2 + $0x18] sm:$0xff]  ;;  %vm63_vm0 = vcmask 1044480  }
  0x27   :  { %140 = vmatprep.mubr.f32.mxu0 %v342_v0  ;;  %211 = vmatprep.mubr.f32.mxu1 %v342_v0  ;;  %v44_v2 = vld [vmem:[#allocation2 + $0x28] sm:$0xff]  ;;  %v46_v5 = vld [vmem:[#allocation2 + $0x38] sm:$0xff]  ;;  %v39_v6 = vld [vmem:[#allocation2] sm:$0xff]  ;;  %vm59_vm1 = vcmask 302080   ;;  %s343_s1 = smov [#allocation7]  }
  0x28   :  { %v244_v4 = vpack.c.bf16 %v44_v2, %v40_v1  ;;  %v43_v7 = vld [vmem:[#allocation2 + $0x20] sm:$0xff]  ;;  %v252_v8 = vpack.c.bf16 %v46_v5, %v42_v3  ;;  %v41_v10 = vld [vmem:[#allocation2 + $0x10] sm:$0xff]  ;;  %v48_v12 = vld [vmem:[#allocation2 + $0x48] sm:$0xff]  ;;  %s228_s6 = sshll.u32 %s343_s1, 4  ;;  %s229_s6 = int_to_ptr.vmem [resolvable:$true] %s228_s6 }
  0x29   :  { %v246_v9 = vpack.c.bf16 %v43_v7, %v39_v6  ;;  %v45_v11 = vld [vmem:[#allocation2 + $0x30] sm:$0xff]  ;;  %v52_v14 = vld [vmem:[#allocation2 + $0x68] sm:$0xff]  ;;  %v50_v15 = vld [vmem:[#allocation2 + $0x58] sm:$0xff]  ;;  %s310_s7 = scalar_lea.vmem %s229_s6, 512  ;;  %p315_p3 = scmp.lt.s32.totalorder %s229_s6, %s229_s6 }
  0x2a   :  { %245 = vmatprep.subr.bf16.mxu0 %v244_v4  ;;  %v254_v13 = vpack.c.bf16 %v45_v11, %v41_v10  ;;  %v54_v16 = vld [vmem:[#allocation2 + $0x78] sm:$0xff]  ;;  %253 = vmatprep.subr.bf16.mxu1 %v252_v8  ;;  %v248_v17 = vpack.c.bf16 %v52_v14, %v48_v12  ;;  %v47_v19 = vld [vmem:[#allocation2 + $0x40] sm:$0xff]  ;;  %v49_v21 = vld [vmem:[#allocation2 + $0x50] sm:$0xff]  ;;  %p311_p2 = scmp.ne.s32.totalorder %s229_s6, %s310_s7  ;;  %p316_p4 = scmp.lt.s32.totalorder %s310_s7, %s310_s7 }
  0x2b   :  { %247 = vmatpush1.bf16.msra.mxu0 %v246_v9  ;;  %v256_v18 = vpack.c.bf16 %v54_v16, %v50_v15  ;;  %v51_v20 = vld [vmem:[#allocation2 + $0x60] sm:$0xff]  ;;  %v53_v23 = vld [vmem:[#allocation2 + $0x70] sm:$0xff]  ;;  %v56_v25 = vld [vmem:[#allocation2 + $0x88] sm:$0x1f] }
  0x2c   :  { %255 = vmatpush1.bf16.msra.mxu1 %v254_v13  ;;  %v250_v22 = vpack.c.bf16 %v51_v20, %v47_v19  ;;  %249 = vmatprep.subr.bf16.mxu0 %v248_v17  ;;  %v258_v24 = vpack.c.bf16 %v53_v23, %v49_v21  ;;  %v58_v26 = vld [vmem:[#allocation2 + $0x98] sm:$0x1f]  ;;  %v55_v27 = vld [vmem:[#allocation2 + $0x80] sm:$0x1f]  ;;  %v57_v28 = vld [vmem:[#allocation2 + $0x90] sm:$0x1f]  ;;  %p317_p5 = por %p316_p4, %p315_p3 }
  0x2d   :  { %257 = vmatprep.subr.bf16.mxu1 %v256_v18  ;;  %v38_v29 = vld [vmem:[#allocation5] sm:$0xff] }
  0x2e   :  { %p318_p6 = pnand %p317_p5, %p311_p2 }
  0x2f   :  { %251 = vmatpush1.bf16.msra.mxu0 %v250_v22 }
  0x30   :  { %259 = vmatpush1.bf16.msra.mxu1 %v258_v24  ;;  %238 = vmatprep.subr.msk.mxu0 %vm63_vm0, %v56_v25 }
  0x31   :  { %241 = vmatprep.subr.msk.mxu1 %vm63_vm0, %v58_v26 }
  0x33   :  { %239 = vmatpush1.msk.msra.mxu0 %vm63_vm0, %v55_v27 }
  0x34   :  { %242 = vmatpush1.msk.msra.mxu1 %vm63_vm0, %v57_v28  ;;  %240 = vmatmul.mubr.msk.f32.vlgmr.msra.gmra.mrb[0].mxu0 %vm59_vm1, %v38_v29 }
  0x35   :  { %243 = vmatmul.mubr.msk.f32.vlgmr.msra.gmra.mrb[0].mxu1 %vm59_vm1, %v38_v29 }
 0x107   :  { %v142_v30 = vpop.f32.mrb[0].mxu0 }
 0x108   :  { %218 = vst [vmem:[#allocation7] sm:$0xff] %v142_v30  ;;  %v213_v31 = vpop.f32.mrb[0].mxu1  ;;  %v144_v32 = vpop.f32.mrb[1].mxu0 }
 0x109   :  { %220 = vst [vmem:[#allocation7 + $0x10] sm:$0xff] %v213_v31  ;;  %219 = vst [vmem:[#allocation7 + $0x8] sm:$0xff] %v144_v32  ;;  %v215_v33 = vpop.f32.mrb[1].mxu1 }
 0x10a   :  { %221 = vst [vmem:[#allocation7 + $0x18] sm:$0xff] %v215_v33 }
 0x10b   :  { %321 = shalt.err (!%p318_p6)
}
 0x10c   :  { %s322_s10 = scalar_lea.hbm %s397_s2, 512 }
 0x10d   :  { %p323_p7 = scmp.ne.s32.totalorder %s397_s2, %s322_s10  ;;  %p326_p8 = scmp.lt.u32.totalorder %s322_s10, %s397_s2 }
 0x10f   :  { %p328_p9 = pnand %p326_p8, %p323_p7 }
 0x111   :  { %331 = shalt.err (!%p328_p9)
}
 0x112   :  { %231 = dma.vmem_to_hbm [thread:$0]  %s229_s6, 512, %s397_s2, [#allocation4]  }
 0x113   :  { %336 = dma.done.wait [#allocation4], 512  }
 0x114   :  { %337 = vsyncadd [#allocation4], 4294966784 }
 0x115   :  { %235 = vsyncpa [#allocation3], 1 }
 0x116   :  { %236 = vsyncpa [#allocation6], 1 }
 0x117   :  { %237 = vsyncpa [#allocation4], 1 }

</bundles_post_ra>
